<compile_context>
chip_gen: v7x
topology: tpu7x:2x2x1
jax: 0.10.0
libtpu: 0.0.40
codegen_flags: <defaults>
</compile_context>

<pallas_src>
import math
import jax
import jax.numpy as jnp
from jax.experimental import pallas as pl
from jax.experimental.pallas import tpu as pltpu


_VMEM_LIMIT = 48 * 1024 * 1024   # explicit scoped-VMEM budget (< v7x 64 MiB)


def _cparams():
    return pltpu.CompilerParams(dimension_semantics=("parallel",),
                                vmem_limit_bytes=_VMEM_LIMIT)


# ----------------------------------------------------------------------------
# Kernel A: DPCA global average pool — emits the (2, C) pooled means of
# (skip, x) for one batch element.  The tiny band conv1d + sigmoid run in the
# wrapper (avoids re-DMA of the (C, C) band matrices every grid step).
# ----------------------------------------------------------------------------
def dpca_pool_kernel(skip_ref, x_ref, o_ref):
    # skip_ref, x_ref: (1, H, W, C);  o_ref: (1, 2, C) f32
    _, H, W, C = skip_ref.shape
    inv_hw = 1.0 / float(H * W)
    ms = jnp.sum(skip_ref[0].astype(jnp.float32).reshape(H * W, C),
                 axis=0, keepdims=True) * inv_hw               # (1, C)
    mg = jnp.sum(x_ref[0].astype(jnp.float32).reshape(H * W, C),
                 axis=0, keepdims=True) * inv_hw               # (1, C)
    o_ref[0, 0:1, :] = ms
    o_ref[0, 1:2, :] = mg


def dpca_pool(skip_nhwc, x_nhwc):
    B, H, W, C = skip_nhwc.shape
    return pl.pallas_call(
        dpca_pool_kernel,
        out_shape=jax.ShapeDtypeStruct((B, 2, C), jnp.float32),
        grid=(B,),
        in_specs=[
            pl.BlockSpec((1, H, W, C), lambda b: (b, 0, 0, 0)),
            pl.BlockSpec((1, H, W, C), lambda b: (b, 0, 0, 0)),
        ],
        out_specs=pl.BlockSpec((1, 2, C), lambda b: (b, 0, 0)),
        compiler_params=_cparams(),
    )(skip_nhwc, x_nhwc)


# ----------------------------------------------------------------------------
# Shared conv tail: build the (H*W, 9*Cin) im2col patch from the zero-padded
# VMEM buffer, run ONE bf16 MXU matmul against the BN-folded (9*Cin, Cout)
# weight, add the folded bias and apply ReLU (f32 epilogue).
# ----------------------------------------------------------------------------
def _im2col_conv3x3(hpad_ref, patch_ref, w_ref, b_ref, o_ref):
    Hp, Wp, Cin = hpad_ref.shape
    H, W = Hp - 2, Wp - 2
    Cout = o_ref.shape[-1]
    for dh in range(3):
        for dw in range(3):
            tap = dh * 3 + dw
            patch_ref[:, tap * Cin:(tap + 1) * Cin] = (
                hpad_ref[dh:dh + H, dw:dw + W, :]
                .reshape(H * W, Cin)
                .astype(patch_ref.dtype))
    acc = jnp.dot(patch_ref[...], w_ref[...],
                  preferred_element_type=jnp.float32)          # (H*W, Cout) f32
    y = jnp.maximum(acc + b_ref[...], 0.0)                     # f32 epilogue
    o_ref[0] = y.reshape(H, W, Cout).astype(o_ref.dtype)


# ----------------------------------------------------------------------------
# Kernel B: fused DPCA gate (sigmoid scale * skip, ReLU) + channel concat
#           + Conv3x3 + folded BatchNorm + ReLU, one batch element per step.
# ----------------------------------------------------------------------------
def fused_gate_concat_conv_kernel(skip_ref, x_ref, scale_ref, w_ref, b_ref,
                                  o_ref, hpad_ref, patch_ref):
    # skip_ref, x_ref : (1, H, W, C)    f32
    # scale_ref       : (1, 1, C)       f32  per-batch DPCA sigmoid gate
    # w_ref           : (9*2C, Cout)    bf16 (BN scale folded in)
    # b_ref           : (1, Cout)       f32  folded BN bias
    # o_ref           : (1, H, W, Cout)
    # hpad_ref        : (H+2, W+2, 2C)  f32  VMEM scratch (zero-padded concat)
    # patch_ref       : (H*W, 9*2C)     bf16 VMEM scratch (im2col)
    _, H, W, C = skip_ref.shape
    hpad_ref[...] = jnp.zeros(hpad_ref.shape, hpad_ref.dtype)
    skip_att = jnp.maximum(skip_ref[0].astype(jnp.float32) * scale_ref[0], 0.0)
    hpad_ref[1:H + 1, 1:W + 1, 0:C] = skip_att                       # concat lo
    hpad_ref[1:H + 1, 1:W + 1, C:2 * C] = x_ref[0].astype(jnp.float32)  # hi
    _im2col_conv3x3(hpad_ref, patch_ref, w_ref, b_ref, o_ref)


def fused_gate_concat_conv(skip_nhwc, x_nhwc, scale, w_bf16, bias):
    B, H, W, C = skip_nhwc.shape
    Cin = 2 * C
    Cout = w_bf16.shape[1]
    return pl.pallas_call(
        fused_gate_concat_conv_kernel,
        out_shape=jax.ShapeDtypeStruct((B, H, W, Cout), jnp.float32),
        grid=(B,),
        in_specs=[
            pl.BlockSpec((1, H, W, C), lambda b: (b, 0, 0, 0)),
            pl.BlockSpec((1, H, W, C), lambda b: (b, 0, 0, 0)),
            pl.BlockSpec((1, 1, C), lambda b: (b, 0, 0)),
            pl.BlockSpec((9 * Cin, Cout), lambda b: (0, 0)),
            pl.BlockSpec((1, Cout), lambda b: (0, 0)),
        ],
        out_specs=pl.BlockSpec((1, H, W, Cout), lambda b: (b, 0, 0, 0)),
        scratch_shapes=[
            pltpu.VMEM((H + 2, W + 2, Cin), jnp.float32),
            pltpu.VMEM((H * W, 9 * Cin), jnp.bfloat16),
        ],
        compiler_params=_cparams(),
    )(skip_nhwc, x_nhwc, scale, w_bf16, bias)


# ----------------------------------------------------------------------------
# Kernel C: Conv3x3 + folded BatchNorm + ReLU (layers 2..nb_Conv).
# ----------------------------------------------------------------------------
def conv_bn_relu_kernel(x_ref, w_ref, b_ref, o_ref, hpad_ref, patch_ref):
    _, H, W, Cin = x_ref.shape
    hpad_ref[...] = jnp.zeros(hpad_ref.shape, hpad_ref.dtype)
    hpad_ref[1:H + 1, 1:W + 1, :] = x_ref[0].astype(hpad_ref.dtype)
    _im2col_conv3x3(hpad_ref, patch_ref, w_ref, b_ref, o_ref)


def conv_bn_relu(x_nhwc, w_bf16, bias):
    B, H, W, Cin = x_nhwc.shape
    Cout = w_bf16.shape[1]
    return pl.pallas_call(
        conv_bn_relu_kernel,
        out_shape=jax.ShapeDtypeStruct((B, H, W, Cout), jnp.float32),
        grid=(B,),
        in_specs=[
            pl.BlockSpec((1, H, W, Cin), lambda b: (b, 0, 0, 0)),
            pl.BlockSpec((9 * Cin, Cout), lambda b: (0, 0)),
            pl.BlockSpec((1, Cout), lambda b: (0, 0)),
        ],
        out_specs=pl.BlockSpec((1, H, W, Cout), lambda b: (b, 0, 0, 0)),
        scratch_shapes=[
            pltpu.VMEM((H + 2, W + 2, Cin), jnp.float32),
            pltpu.VMEM((H * W, 9 * Cin), jnp.bfloat16),
        ],
        compiler_params=_cparams(),
    )(x_nhwc, w_bf16, bias)


# ----------------------------------------------------------------------------
# Parameter init + glue (deterministic, synthetic — no checkpoint load).
# ----------------------------------------------------------------------------
def dpca_kernel_size(channels, gamma=2, b=1):
    k = int(abs((math.log(channels, 2) + b) / gamma))
    return k if k % 2 else k + 1


def init_params(key, in_channels, out_channels, nb_Conv):
    C = in_channels // 2
    k = dpca_kernel_size(C)
    keys = jax.random.split(key, 2 + 4 * nb_Conv)
    w1 = jax.random.normal(keys[0], (k,), jnp.float32) * 0.5   # DPCA conv1 (1,1,k)
    w2 = jax.random.normal(keys[1], (k,), jnp.float32) * 0.5   # DPCA conv2 (1,1,k)
    convs = []
    cin = in_channels
    for i in range(nb_Conv):
        cout = out_channels
        kw, kb, kg, kbe = keys[2 + 4 * i: 2 + 4 * i + 4]
        w = jax.random.normal(kw, (cout, cin, 3, 3), jnp.float32) / math.sqrt(9 * cin)
        bconv = jax.random.normal(kb, (cout,), jnp.float32) * 0.1
        gamma = 1.0 + 0.1 * jax.random.normal(kg, (cout,), jnp.float32)
        beta = 0.1 * jax.random.normal(kbe, (cout,), jnp.float32)
        mean = jnp.zeros((cout,), jnp.float32)
        var = jnp.ones((cout,), jnp.float32)
        convs.append(dict(w=w, b=bconv, gamma=gamma, beta=beta, mean=mean, var=var))
        cin = cout
    return dict(w1=w1, w2=w2, convs=convs)


def band_matrix(w, C):
    """(C, C) matrix M s.t. (m @ M)[c] == PyTorch conv1d(m, w, padding='same')[c]."""
    k = w.shape[0]
    p = (k - 1) // 2
    idx = jnp.arange(C)
    j = idx[:, None] - idx[None, :] + p          # M[c', c] uses w[c' - c + p]
    valid = (j >= 0) & (j < k)
    return jnp.where(valid, w[jnp.clip(j, 0, k - 1)], 0.0).astype(jnp.float32)


def fold_bn_into_conv(layer, eps):
    """Fold inference-mode BN into the conv: bf16 weight (9*Cin, Cout) + f32 bias."""
    cout, cin = layer["w"].shape[0], layer["w"].shape[1]
    inv_std = layer["gamma"] / jnp.sqrt(layer["var"] + eps)
    w2d = jnp.transpose(layer["w"], (2, 3, 1, 0)).reshape(9 * cin, cout)
    w_folded = (w2d * inv_std[None, :]).astype(jnp.bfloat16)
    bias = ((layer["b"] - layer["mean"]) * inv_std + layer["beta"])[None, :]
    return w_folded, bias.astype(jnp.float32)


def upblock_attention_low(params, x_nchw, skip_nchw, eps=1e-5):
    """Forward of UpBlock_attention_low. Inputs/outputs are NCHW (PyTorch layout)."""
    x = jnp.transpose(x_nchw, (0, 2, 3, 1)).astype(jnp.float32)        # NHWC
    skip = jnp.transpose(skip_nchw, (0, 2, 3, 1)).astype(jnp.float32)  # NHWC
    B, H, W, C = x.shape

    # DPCA: Pallas pooling kernel -> tiny band conv1d + sigmoid in the wrapper.
    means = dpca_pool(skip, x)                       # (B, 2, C) f32
    w1m = band_matrix(params["w1"], C)               # conv1 acts on pooled skip_x
    w2m = band_matrix(params["w2"], C)               # conv2 acts on pooled x (= g)
    att = 0.5 * (means[:, 0, :] @ w1m + means[:, 1, :] @ w2m)
    scale = jax.nn.sigmoid(att)[:, None, :]          # (B, 1, C)

    # Layer 1: fused gate + ReLU + channel-concat + Conv3x3 + BN + ReLU.
    w_bf, bias = fold_bn_into_conv(params["convs"][0], eps)
    h = fused_gate_concat_conv(skip, x, scale, w_bf, bias)

    # Layers 2..nb_Conv: Conv3x3 + BN + ReLU.
    for layer in params["convs"][1:]:
        w_bf, bias = fold_bn_into_conv(layer, eps)
        h = conv_bn_relu(h, w_bf, bias)

    return jnp.transpose(h, (0, 3, 1, 2))            # back to NCHW


# ----------------------------------------------------------------------------
# References (for correctness checks).
# ----------------------------------------------------------------------------
def _dpca_scale_ref(params, x_nchw, skip_nchw):
    B, C, H, W = x_nchw.shape
    k = params["w1"].shape[0]
    p = (k - 1) // 2

    def conv1d_same(m, w):  # m: (B, C)
        mp = jnp.pad(m, ((0, 0), (p, p)))
        return sum(w[j] * mp[:, j:j + C] for j in range(k))

    mx = jnp.mean(skip_nchw, axis=(2, 3))
    mg = jnp.mean(x_nchw, axis=(2, 3))
    att = 0.5 * (conv1d_same(mx, params["w1"]) + conv1d_same(mg, params["w2"]))
    return jax.nn.sigmoid(att)[:, :, None, None]


def reference_f32(params, x_nchw, skip_nchw, eps=1e-5):
    """Pure f32 reference (faithful to the PyTorch module, inference-mode BN)."""
    scale = _dpca_scale_ref(params, x_nchw, skip_nchw)
    skip_att = jnp.maximum(skip_nchw * scale, 0.0)
    h = jnp.concatenate([skip_att, x_nchw], axis=1)
    for layer in params["convs"]:
        w_hwio = jnp.transpose(layer["w"], (2, 3, 1, 0))
        y = jax.lax.conv_general_dilated(
            jnp.transpose(h, (0, 2, 3, 1)), w_hwio, (1, 1), "SAME",
            dimension_numbers=("NHWC", "HWIO", "NHWC"))
        y = y + layer["b"][None, None, None, :]
        inv_std = layer["gamma"] / jnp.sqrt(layer["var"] + eps)
        y = (y - layer["mean"]) * inv_std + layer["beta"]
        y = jnp.maximum(y, 0.0)
        h = jnp.transpose(y, (0, 3, 1, 2))
    return h


def reference_bf16_matched(params, x_nchw, skip_nchw, eps=1e-5):
    """Reference that mimics the kernels' precision: BN folded into weights,
    conv inputs/weights cast to bf16, f32 accumulation, f32 epilogue."""
    scale = _dpca_scale_ref(params, x_nchw, skip_nchw)
    skip_att = jnp.maximum(skip_nchw * scale, 0.0)
    h = jnp.transpose(jnp.concatenate([skip_att, x_nchw], axis=1), (0, 2, 3, 1))
    for layer in params["convs"]:
        inv_std = layer["gamma"] / jnp.sqrt(layer["var"] + eps)
        w_hwio = jnp.transpose(layer["w"], (2, 3, 1, 0)) * inv_std[None, None, None, :]
        bias = (layer["b"] - layer["mean"]) * inv_std + layer["beta"]
        y = jax.lax.conv_general_dilated(
            h.astype(jnp.bfloat16), w_hwio.astype(jnp.bfloat16), (1, 1), "SAME",
            dimension_numbers=("NHWC", "HWIO", "NHWC"),
            preferred_element_type=jnp.float32)
        h = jnp.maximum(y + bias[None, None, None, :], 0.0)
    return jnp.transpose(h, (0, 3, 1, 2))


if __name__ == "__main__":
    key = jax.random.PRNGKey(0)
    B = 2
    in_channels, out_channels, nb_Conv = 16, 8, 2   # x/skip each have in_channels//2 = 8
    C = in_channels // 2
    H = W = 16

    k1, k2, k3 = jax.random.split(key, 3)
    x = jax.random.normal(k1, (B, C, H, W), jnp.float32)       # decoder feature
    skip = jax.random.normal(k2, (B, C, H, W), jnp.float32)    # skip connection
    params = init_params(k3, in_channels, out_channels, nb_Conv)

    out = jax.block_until_ready(upblock_attention_low(params, x, skip))
    assert out.shape == (B, out_channels, H, W), out.shape

    # Strict check vs a precision-matched reference (bf16 matmuls, f32 acc).
    ref_m = reference_bf16_matched(params, x, skip)
    err_m = float(jnp.max(jnp.abs(out - ref_m)))
    assert err_m < 1e-2, f"bf16-matched max abs error too large: {err_m}"

    # Loose check vs the pure-f32 reference (bounds bf16 matmul rounding).
    ref_f = reference_f32(params, x, skip)
    err_f = float(jnp.max(jnp.abs(out - ref_f)))
    assert err_f < 1e-1, f"f32 reference max abs error too large: {err_f}"

    print("KERNEL_OK")
</pallas_src>

<mosaic_0001>
module attributes {stable_mosaic.version = 11 : i64} {
  func.func @dpca_pool_kernel(%arg0: i32, %arg1: memref<1x16x16x8xf32, #tpu.memory_space<vmem>>, %arg2: memref<1x16x16x8xf32, #tpu.memory_space<vmem>>, %arg3: memref<1x2x8xf32, #tpu.memory_space<vmem>>) attributes {dimension_semantics = [#tpu.dimension_semantics<parallel>], iteration_bounds = array<i64: 2>, scalar_prefetch = 0 : i64, scratch_operands = 0 : i64, tpu.core_type = #tpu.core_type<tc>, window_params = [{transform_indices = @transform_0, window_bounds = array<i64: 1, 16, 16, 8>}, {transform_indices = @transform_1, window_bounds = array<i64: 1, 16, 16, 8>}, {transform_indices = @transform_2, window_bounds = array<i64: 1, 2, 8>}]} {
    %c0 = arith.constant 0 : index
    %c0_0 = arith.constant 0 : index
    %c0_1 = arith.constant 0 : index
    %c0_2 = arith.constant 0 : index
    %0 = vector.load %arg1[%c0, %c0_0, %c0_1, %c0_2] : memref<1x16x16x8xf32, #tpu.memory_space<vmem>>, vector<1x16x16x8xf32>
    %1 = vector.shape_cast %0 : vector<1x16x16x8xf32> to vector<16x16x8xf32>
    %2 = vector.shape_cast %1 : vector<16x16x8xf32> to vector<256x8xf32>
    %cst = arith.constant dense<0.000000e+00> : vector<8xf32>
    %3 = vector.multi_reduction <add>, %2, %cst [0] : vector<256x8xf32> to vector<8xf32>
    %4 = vector.shape_cast %3 : vector<8xf32> to vector<1x8xf32>
    %cst_3 = arith.constant 3.906250e-03 : f32
    %5 = vector.broadcast %cst_3 : f32 to vector<1x8xf32>
    %6 = arith.mulf %4, %5 : vector<1x8xf32>
    %c0_4 = arith.constant 0 : index
    %c0_5 = arith.constant 0 : index
    %c0_6 = arith.constant 0 : index
    %c0_7 = arith.constant 0 : index
    %7 = vector.load %arg2[%c0_4, %c0_5, %c0_6, %c0_7] : memref<1x16x16x8xf32, #tpu.memory_space<vmem>>, vector<1x16x16x8xf32>
    %8 = vector.shape_cast %7 : vector<1x16x16x8xf32> to vector<16x16x8xf32>
    %9 = vector.shape_cast %8 : vector<16x16x8xf32> to vector<256x8xf32>
    %cst_8 = arith.constant dense<0.000000e+00> : vector<8xf32>
    %10 = vector.multi_reduction <add>, %9, %cst_8 [0] : vector<256x8xf32> to vector<8xf32>
    %11 = vector.shape_cast %10 : vector<8xf32> to vector<1x8xf32>
    %cst_9 = arith.constant 3.906250e-03 : f32
    %12 = vector.broadcast %cst_9 : f32 to vector<1x8xf32>
    %13 = arith.mulf %11, %12 : vector<1x8xf32>
    %c0_10 = arith.constant 0 : index
    %c0_11 = arith.constant 0 : index
    %c0_12 = arith.constant 0 : index
    %14 = vector.load %arg3[%c0_10, %c0_11, %c0_12] : memref<1x2x8xf32, #tpu.memory_space<vmem>>, vector<1x1x8xf32>
    %15 = vector.shape_cast %14 : vector<1x1x8xf32> to vector<1x8xf32>
    %16 = vector.shape_cast %6 : vector<1x8xf32> to vector<1x1x8xf32>
    tpu.vector_store %arg3[%c0_10, %c0_11, %c0_12], %16 {strides = array<i32>} : memref<1x2x8xf32, #tpu.memory_space<vmem>>, vector<1x1x8xf32>,
    %c0_13 = arith.constant 0 : index
    %c1 = arith.constant 1 : index
    %c0_14 = arith.constant 0 : index
    %17 = vector.load %arg3[%c0_13, %c1, %c0_14] : memref<1x2x8xf32, #tpu.memory_space<vmem>>, vector<1x1x8xf32>
    %18 = vector.shape_cast %17 : vector<1x1x8xf32> to vector<1x8xf32>
    %19 = vector.shape_cast %13 : vector<1x8xf32> to vector<1x1x8xf32>
    tpu.vector_store %arg3[%c0_13, %c1, %c0_14], %19 {strides = array<i32>} : memref<1x2x8xf32, #tpu.memory_space<vmem>>, vector<1x1x8xf32>,
    return
  }
  func.func @transform_0(%arg0: i32) -> (i32, i32, i32, i32) {
    %c0_i32 = arith.constant 0 : i32
    %c0_i32_0 = arith.constant 0 : i32
    %c0_i32_1 = arith.constant 0 : i32
    %c0_i32_2 = arith.constant 0 : i32
    return %arg0, %c0_i32, %c0_i32_0, %c0_i32_1 : i32, i32, i32, i32
  }
  func.func @transform_1(%arg0: i32) -> (i32, i32, i32, i32) {
    %c0_i32 = arith.constant 0 : i32
    %c0_i32_0 = arith.constant 0 : i32
    %c0_i32_1 = arith.constant 0 : i32
    %c0_i32_2 = arith.constant 0 : i32
    return %arg0, %c0_i32, %c0_i32_0, %c0_i32_1 : i32, i32, i32, i32
  }
  func.func @transform_2(%arg0: i32) -> (i32, i32, i32) {
    %c0_i32 = arith.constant 0 : i32
    %c0_i32_0 = arith.constant 0 : i32
    %c0_i32_1 = arith.constant 0 : i32
    return %arg0, %c0_i32, %c0_i32_0 : i32, i32, i32
  }
}

</mosaic_0001>

<bundles_post_ra>
// kernel: tpu_custom_call.1
= control target key start
LH: loop header
LB: loop body
LE: loop exit
PB: predicated region body
PF: predicated region fallthrough
CT: control target
= control target key end

     0   :  { %7 = vsyncpa [#allocation3], 0  ;;  %s824_s0 = inlined_call_operand.vmem [shape: f32[2,16,16,8], index: 0, kind: input, shape index: {}]   ;;  %s825_s1 = inlined_call_operand.vmem [shape: f32[2,16,16,8], index: 1, kind: input, shape index: {}]   ;;  %s826_s2 = inlined_call_operand.hbm [shape: f32[2,2,8], index: 2, kind: output, shape index: {}]  }
   0x1   :  { %9 = vsyncpa [#allocation3 + $0x1], 0  ;;  %s589_s9 = smov 0   ;;  %s591_s10 = smov 0  }
   0x2   :  { %s593_s11 = smov 0   ;;  %s595_s12 = smov 0  }
   0x3 LB: > { %s610_s13 = sadd.s32 4294967295, %s571_s12   ;;  %s455_s14 = sadd.s32 4294967294, %s571_s12   ;;  %s571_s12 = sphi %s595_s12, %s832_s12   ;;  %s567_s11 = sphi %s593_s11, %s831_s11   ;;  %s563_s10 = sphi %s591_s10, %s830_s10   ;;  %s559_s9 = sphi %s589_s9, %s829_s9  }
   0x4   : > { %s614_s15 = sadd.s32 1, %s571_s12   ;;  %s74_s16 = sadd.s32 1, %s567_s11 }
   0x5   : > { %s71_s17 = ssub.s32 %s571_s12, %s614_s15  ;;  %p84_p0 = scmp.ne.s32.totalorder %s567_s11, %s563_s10 }
   0x6   : > { %p72_p1 = scmp.eq.s32.totalorder %s71_s17, 0  ;;  %p85_p2 = scmp.eq.s32.totalorder %s610_s13, 1 }
   0x7   : > { %p90_p3 = scmp.ne.s32.totalorder %s563_s10, %s559_s9  ;;  %p91_p4 = scmp.eq.s32.totalorder %s455_s14, 1 }
   0x8   : > { %s625_s18 = scalar_select %p72_p1, %s567_s11, %s74_s16  }
   0x9   : > { %p627_p5 = por %p85_p2, %p84_p0  ;;  %p631_p6 = por %p91_p4, %p90_p3 }
   0xa   : > { %p458_p7 = scmp.ge.s32.totalorder %s571_s12, 1  ;;  %p125_p8 = scmp.lt.s32.totalorder %s571_s12, 3 }
   0xc   : > { %p126_p9 = pnand %p458_p7, %p125_p8 }
   0xd   : > { %p152_p10 = scmp.lt.s32.totalorder (!%p126_p9), %s610_s13, 1  ;;  %vm194_vm0 = vcmask (!%p126_p9), 64512   ;;  %s149_s29 = sand.u32 (!%p126_p9), 1, %s563_s10   ;;  %vm367_vm1 = vcmask (!%p126_p9), 57344  }
   0xe   : > { %129 = sbr.rel (%p126_p9) target bundleno = 120 (0x78), region = 28  ;;  %s459_s30 = sshll.u32 (!%p126_p9), %s149_s29, 1 }
   0xf   : > { %s151_s3 = scalar_lea.vmem (!%p126_p9), [#allocation2], %s459_s30  ;;  %s465_s4 = sshll.u32 (!%p126_p9), %s610_s13, 5 }
  0x10   : > { %s384_s5 = sshll.u32 (!%p126_p9), %s151_s3, 4  ;;  %s782_s8 = scalar_lea.hbm (!%p126_p9), %s826_s2, %s465_s4  ;;  %s784_s5 = int_to_ptr.vmem [resolvable:$true] %s384_s5 }
  0x11   : > { %s371_s14 = scalar_lea.sflag (!%p126_p9), [#allocation3], %s149_s29  ;;  %s509_s16 = scalar_lea.vmem (!%p126_p9), %s784_s5, 32 }
  0x12   : > { %p510_p11 = scmp.ne.s32.totalorder (!%p126_p9), %s784_s5, %s509_s16 }
  0x14   : > { %p511_p12 = pnand (!%p126_p9), %p510_p11, %p627_p5 }
  0x15   : > { %s153_s21 = scalar_select %p152_p10, %s610_s13, 1 }
  0x16   : > { %p512_p13 = pneg %p511_p12  ;;  %s573_s13 = smov [#allocation2]  }
  0x17   : > { %s468_s22 = sshll.u32 %s153_s21, 8  ;;  %s513_s17 = sshll.u32 %s573_s13, 4  ;;  %s514_s17 = int_to_ptr.vmem [resolvable:$false] %s513_s17 }
  0x18   : > { %s642_s25 = scalar_lea.vmem %s824_s0, %s468_s22  ;;  %s659_s28 = scalar_lea.vmem %s825_s1, %s468_s22 }
  0x19   : > { %v162_v0 = vld [vmem:[%s642_s25] sm:$0xff]  ;;  %v163_v1 = vld [vmem:[%s642_s25 + $0x8] sm:$0xff]  ;;  %v164_v2 = vld [vmem:[%s642_s25 + $0x10] sm:$0xff]  ;;  %s515_s21 = scalar_lea.vmem %s514_s17, 64  ;;  %p516_p0 = scmp.lt.s32.totalorder %s784_s5, %s514_s17 }
  0x1a   : > { %v165_v3 = vld [vmem:[%s642_s25 + $0x18] sm:$0xff]  ;;  %v195_v4 = vsel %vm194_vm0, %v162_v0, 0.0  ;;  %v196_v5 = vsel %vm194_vm0, %v163_v1, 0.0  ;;  %v198_v6 = vsel %vm194_vm0, %v164_v2, 0.0  ;;  %v166_v7 = vld [vmem:[%s642_s25 + $0x20] sm:$0xff]  ;;  %v167_v10 = vld [vmem:[%s642_s25 + $0x28] sm:$0xff]  ;;  %p517_p1 = scmp.lt.s32.totalorder %s515_s21, %s509_s16 }
  0x1b   : > { %v197_v8 = vadd.f32 %v196_v5, %v195_v4  ;;  %v200_v9 = vsel %vm194_vm0, %v165_v3, 0.0  ;;  %v202_v12 = vsel %vm194_vm0, %v166_v7, 0.0  ;;  %v168_v13 = vld [vmem:[%s642_s25 + $0x30] sm:$0xff]  ;;  %v204_v15 = vsel %vm194_vm0, %v167_v10, 0.0  ;;  %v169_v16 = vld [vmem:[%s642_s25 + $0x38] sm:$0xff]  ;;  %v170_v19 = vld [vmem:[%s642_s25 + $0x40] sm:$0xff] }
  0x1c   : > { %v206_v18 = vsel %vm194_vm0, %v168_v13, 0.0  ;;  %v265_v21 = vld [vmem:[%s659_s28] sm:$0xff]  ;;  %v208_v22 = vsel %vm194_vm0, %v169_v16, 0.0  ;;  %v266_v23 = vld [vmem:[%s659_s28 + $0x8] sm:$0xff]  ;;  %v267_v24 = vld [vmem:[%s659_s28 + $0x10] sm:$0xff]  ;;  %v210_v31 = vsel %vm194_vm0, %v170_v19, 0.0  ;;  %p518_p2 = por %p517_p1, %p516_p0 }
  0x1d   : > { %v199_v11 = vadd.f32 %v198_v6, %v197_v8  ;;  %v268_v25 = vld [vmem:[%s659_s28 + $0x18] sm:$0xff]  ;;  %v297_v26 = vsel %vm194_vm0, %v265_v21, 0.0  ;;  %v171_v27 = vld [vmem:[%s642_s25 + $0x48] sm:$0xff]  ;;  %v298_v29 = vsel %vm194_vm0, %v266_v23, 0.0  ;;  %v300_v30 = vsel %vm194_vm0, %v267_v24, 0.0  ;;  %v269_v32 = vld [vmem:[%s659_s28 + $0x20] sm:$0xff] }
  0x1e   : > { %v299_v33 = vadd.f32 %v298_v29, %v297_v26  ;;  %v172_v34 = vld [vmem:[%s642_s25 + $0x50] sm:$0xff]  ;;  %v302_v36 = vsel %vm194_vm0, %v268_v25, 0.0  ;;  %v212_v37 = vsel %vm194_vm0, %v171_v27, 0.0  ;;  %v270_v38 = vld [vmem:[%s659_s28 + $0x28] sm:$0xff]  ;;  %v173_v40 = vld [vmem:[%s642_s25 + $0x58] sm:$0xff]  ;;  %v304_v42 = vsel %vm194_vm0, %v269_v32, 0.0  ;;  %p519_p3 = pnand %p518_p2, %p512_p13 }
  0x1f   : > { %v201_v14 = vadd.f32 %v200_v9, %v199_v11  ;;  %v214_v43 = vsel %vm194_vm0, %v172_v34, 0.0  ;;  %v271_v44 = vld [vmem:[%s659_s28 + $0x30] sm:$0xff]  ;;  %v174_v46 = vld [vmem:[%s642_s25 + $0x60] sm:$0xff]  ;;  %v306_v48 = vsel %vm194_vm0, %v270_v38, 0.0  ;;  %v216_v49 = vsel %vm194_vm0, %v173_v40, 0.0  ;;  %v272_v50 = vld [vmem:[%s659_s28 + $0x38] sm:$0xff] }
  0x20   : > { %v301_v39 = vadd.f32 %v300_v30, %v299_v33  ;;  %v175_v52 = vld [vmem:[%s642_s25 + $0x68] sm:$0xff]  ;;  %v308_v54 = vsel %vm194_vm0, %v271_v44, 0.0  ;;  %v218_v55 = vsel %vm194_vm0, %v174_v46, 0.0  ;;  %v273_v56 = vld [vmem:[%s659_s28 + $0x40] sm:$0xff]  ;;  %v176_v58 = vld [vmem:[%s642_s25 + $0x70] sm:$0xff]  ;;  %v310_v60 = vsel %vm194_vm0, %v272_v50, 0.0 }
  0x21   : > { %v203_v17 = vadd.f32 %v202_v12, %v201_v14  ;;  %v220_v61 = vsel %vm194_vm0, %v175_v52, 0.0  ;;  %v274_v62 = vld [vmem:[%s659_s28 + $0x48] sm:$0xff]  ;;  %v177_v0 = vld [vmem:[%s642_s25 + $0x78] sm:$0xff]  ;;  %v312_v2 = vsel %vm194_vm0, %v273_v56, 0.0  ;;  %v222_v3 = vsel %vm194_vm0, %v176_v58, 0.0  ;;  %v275_v4 = vld [vmem:[%s659_s28 + $0x50] sm:$0xff] }
  0x22   : > { %v303_v45 = vadd.f32 %v302_v36, %v301_v39  ;;  %v178_v6 = vld [vmem:[%s642_s25 + $0x80] sm:$0xff]  ;;  %v314_v8 = vsel %vm194_vm0, %v274_v62, 0.0  ;;  %v224_v9 = vsel %vm194_vm0, %v177_v0, 0.0  ;;  %v276_v10 = vld [vmem:[%s659_s28 + $0x58] sm:$0xff]  ;;  %v179_v12 = vld [vmem:[%s642_s25 + $0x88] sm:$0xff]  ;;  %v316_v14 = vsel %vm194_vm0, %v275_v4, 0.0 }
  0x23   : > { %v205_v20 = vadd.f32 %v204_v15, %v203_v17  ;;  %v226_v15 = vsel %vm194_vm0, %v178_v6, 0.0  ;;  %v277_v16 = vld [vmem:[%s659_s28 + $0x60] sm:$0xff]  ;;  %v228_v21 = vsel %vm194_vm0, %v179_v12, 0.0  ;;  %v181_v24 = vld [vmem:[%s642_s25 + $0x98] sm:$0xff]  ;;  %v183_v36 = vld [vmem:[%s642_s25 + $0xa8] sm:$0xff] }
  0x24   : > { %v305_v51 = vadd.f32 %v304_v42, %v303_v45  ;;  %v320_v26 = vsel %vm194_vm0, %v277_v16, 0.0  ;;  %v182_v30 = vld [vmem:[%s642_s25 + $0xa0] sm:$0xff]  ;;  %v232_v33 = vsel %vm194_vm0, %v181_v24, 0.0  ;;  %v280_v34 = vld [vmem:[%s659_s28 + $0x78] sm:$0xff]  ;;  %v184_v42 = vld [vmem:[%s642_s25 + $0xb0] sm:$0xff]  ;;  %v236_v45 = vsel %vm194_vm0, %v183_v36, 0.0 }
  0x25   : > { %v207_v28 = vadd.f32 %v206_v18, %v205_v20  ;;  %v180_v18 = vld [vmem:[%s642_s25 + $0x90] sm:$0xff]  ;;  %v318_v20 = vsel %vm194_vm0, %v276_v10, 0.0  ;;  %v234_v39 = vsel %vm194_vm0, %v182_v30, 0.0  ;;  %v281_v40 = vld [vmem:[%s659_s28 + $0x80] sm:$0xff]  ;;  %v326_v44 = vsel %vm194_vm0, %v280_v34, 0.0  ;;  %v282_v46 = vld [vmem:[%s659_s28 + $0x88] sm:$0xff] }
  0x26   : > { %v307_v57 = vadd.f32 %v306_v48, %v305_v51  ;;  %v230_v27 = vsel %vm194_vm0, %v180_v18, 0.0  ;;  %v185_v48 = vld [vmem:[%s642_s25 + $0xb8] sm:$0xff]  ;;  %v328_v50 = vsel %vm194_vm0, %v281_v40, 0.0  ;;  %v238_v51 = vsel %vm194_vm0, %v184_v42, 0.0  ;;  %v283_v52 = vld [vmem:[%s659_s28 + $0x90] sm:$0xff]  ;;  %v285_v0 = vld [vmem:[%s659_s28 + $0xa0] sm:$0xff] }
  0x27   : > { %v209_v35 = vadd.f32 %v208_v22, %v207_v28  ;;  %v278_v22 = vld [vmem:[%s659_s28 + $0x68] sm:$0xff]  ;;  %v279_v28 = vld [vmem:[%s659_s28 + $0x70] sm:$0xff]  ;;  %v330_v56 = vsel %vm194_vm0, %v282_v46, 0.0  ;;  %v284_v58 = vld [vmem:[%s659_s28 + $0x98] sm:$0xff]  ;;  %v332_v62 = vsel %vm194_vm0, %v283_v52, 0.0  ;;  %v336_v10 = vsel %vm194_vm0, %v285_v0, 0.0 }
  0x28   : > { %v309_v63 = vadd.f32 %v308_v54, %v307_v57  ;;  %v322_v32 = vsel %vm194_vm0, %v278_v22, 0.0  ;;  %v324_v38 = vsel %vm194_vm0, %v279_v28, 0.0  ;;  %v186_v54 = vld [vmem:[%s642_s25 + $0xc0] sm:$0xff]  ;;  %v240_v57 = vsel %vm194_vm0, %v185_v48, 0.0  ;;  %v286_v6 = vld [vmem:[%s659_s28 + $0xa8] sm:$0xff]  ;;  %v287_v12 = vld [vmem:[%s659_s28 + $0xb0] sm:$0xff] }
  0x29   : > { %v211_v41 = vadd.f32 %v210_v31, %v209_v35  ;;  %v334_v4 = vsel %vm194_vm0, %v284_v58, 0.0  ;;  %v338_v16 = vsel %vm194_vm0, %v286_v6, 0.0  ;;  %v288_v18 = vld [vmem:[%s659_s28 + $0xb8] sm:$0xff]  ;;  %v340_v22 = vsel %vm194_vm0, %v287_v12, 0.0  ;;  %v289_v24 = vld [vmem:[%s659_s28 + $0xc0] sm:$0xff]  ;;  %v290_v30 = vld [vmem:[%s659_s28 + $0xc8] sm:$0xff] }
  0x2a   : > { %v311_v5 = vadd.f32 %v310_v60, %v309_v63  ;;  %v187_v60 = vld [vmem:[%s642_s25 + $0xc8] sm:$0xff]  ;;  %v242_v63 = vsel %vm194_vm0, %v186_v54, 0.0  ;;  %v342_v28 = vsel %vm194_vm0, %v288_v18, 0.0  ;;  %v344_v34 = vsel %vm194_vm0, %v289_v24, 0.0  ;;  %v291_v36 = vld [vmem:[%s659_s28 + $0xd0] sm:$0xff] }
  0x2b   : > { %v213_v47 = vadd.f32 %v212_v37, %v211_v41 }
  0x2c   : > { %v313_v11 = vadd.f32 %v312_v2, %v311_v5  ;;  %v188_v2 = vld [vmem:[%s642_s25 + $0xd0] sm:$0xff]  ;;  %v244_v5 = vsel %vm194_vm0, %v187_v60, 0.0 }
  0x2d   : > { %v215_v53 = vadd.f32 %v214_v43, %v213_v47 }
  0x2e   : > { %v315_v17 = vadd.f32 %v314_v8, %v313_v11  ;;  %v189_v8 = vld [vmem:[%s642_s25 + $0xd8] sm:$0xff]  ;;  %v246_v11 = vsel %vm194_vm0, %v188_v2, 0.0 }
  0x2f   : > { %v217_v59 = vadd.f32 %v216_v49, %v215_v53 }
  0x30   : > { %v317_v23 = vadd.f32 %v316_v14, %v315_v17  ;;  %v190_v14 = vld [vmem:[%s642_s25 + $0xe0] sm:$0xff]  ;;  %v248_v17 = vsel %vm194_vm0, %v189_v8, 0.0 }
  0x31   : > { %v219_v1 = vadd.f32 %v218_v55, %v217_v59 }
  0x32   : > { %v319_v29 = vadd.f32 %v318_v20, %v317_v23  ;;  %v191_v20 = vld [vmem:[%s642_s25 + $0xe8] sm:$0xff]  ;;  %v250_v23 = vsel %vm194_vm0, %v190_v14, 0.0 }
  0x33   : > { %v221_v7 = vadd.f32 %v220_v61, %v219_v1 }
  0x34   : > { %v321_v35 = vadd.f32 %v320_v26, %v319_v29  ;;  %v192_v26 = vld [vmem:[%s642_s25 + $0xf0] sm:$0xff]  ;;  %v252_v29 = vsel %vm194_vm0, %v191_v20, 0.0 }
  0x35   : > { %v223_v13 = vadd.f32 %v222_v3, %v221_v7 }
  0x36   : > { %v323_v41 = vadd.f32 %v322_v32, %v321_v35  ;;  %v193_v32 = vld [vmem:[%s642_s25 + $0xf8] sm:$0xff]  ;;  %v254_v35 = vsel %vm194_vm0, %v192_v26, 0.0 }
  0x37   : > { %v225_v19 = vadd.f32 %v224_v9, %v223_v13  ;;  %v256_v40 = vsel %vm194_vm0, %v193_v32, 0.0 }
  0x38   : > { %v325_v47 = vadd.f32 %v324_v38, %v323_v41  ;;  %v292_v41 = vld [vmem:[%s659_s28 + $0xd8] sm:$0xff] }
  0x39   : > { %v227_v25 = vadd.f32 %v226_v15, %v225_v19  ;;  %v350_v48 = vsel %vm194_vm0, %v292_v41, 0.0 }
  0x3a   : > { %v327_v53 = vadd.f32 %v326_v44, %v325_v47  ;;  %v348_v44 = vsel %vm194_vm0, %v291_v36, 0.0 }
  0x3b   : > { %v229_v31 = vadd.f32 %v228_v21, %v227_v25 }
  0x3c   : > { %v329_v59 = vadd.f32 %v328_v50, %v327_v53  ;;  %v295_v53 = vld [vmem:[%s659_s28 + $0xf0] sm:$0xff] }
  0x3d   : > { %v231_v37 = vadd.f32 %v230_v27, %v229_v31  ;;  %v356_v60 = vsel %vm194_vm0, %v295_v53, 0.0 }
  0x3e   : > { %v331_v1 = vadd.f32 %v330_v56, %v329_v59 }
  0x3f   : > { %v233_v43 = vadd.f32 %v232_v33, %v231_v37 }
  0x40   : > { %v333_v7 = vadd.f32 %v332_v62, %v331_v1 }
  0x41   : > { %v235_v49 = vadd.f32 %v234_v39, %v233_v43  ;;  %v346_v39 = vsel %vm194_vm0, %v290_v30, 0.0 }
  0x42   : > { %v335_v13 = vadd.f32 %v334_v4, %v333_v7 }
  0x43   : > { %v237_v55 = vadd.f32 %v236_v45, %v235_v49  ;;  %v293_v45 = vld [vmem:[%s659_s28 + $0xe0] sm:$0xff]  ;;  %v294_v49 = vld [vmem:[%s659_s28 + $0xe8] sm:$0xff] }
  0x44   : > { %v337_v19 = vadd.f32 %v336_v10, %v335_v13  ;;  %v352_v52 = vsel %vm194_vm0, %v293_v45, 0.0  ;;  %v354_v56 = vsel %vm194_vm0, %v294_v49, 0.0 }
  0x45   : > { %v239_v61 = vadd.f32 %v238_v51, %v237_v55 }
  0x46   : > { %v339_v25 = vadd.f32 %v338_v16, %v337_v19 }
  0x47   : > { %v241_v3 = vadd.f32 %v240_v57, %v239_v61  ;;  %v296_v57 = vld [vmem:[%s659_s28 + $0xf8] sm:$0xff] }
  0x48   : > { %v341_v31 = vadd.f32 %v340_v22, %v339_v25 }
  0x49   : > { %v243_v9 = vadd.f32 %v242_v63, %v241_v3  ;;  %v358_v63 = vsel %vm194_vm0, %v296_v57, 0.0 }
  0x4a   : > { %v343_v37 = vadd.f32 %v342_v28, %v341_v31 }
  0x4b   : > { %v245_v15 = vadd.f32 %v244_v5, %v243_v9 }
  0x4c   : > { %v345_v42 = vadd.f32 %v344_v34, %v343_v37 }
  0x4d   : > { %v247_v21 = vadd.f32 %v246_v11, %v245_v15 }
  0x4e   : > { %v347_v46 = vadd.f32 %v346_v39, %v345_v42 }
  0x4f   : > { %v249_v27 = vadd.f32 %v248_v17, %v247_v21 }
  0x50   : > { %v349_v50 = vadd.f32 %v348_v44, %v347_v46 }
  0x51   : > { %v251_v33 = vadd.f32 %v250_v23, %v249_v27 }
  0x52   : > { %v351_v54 = vadd.f32 %v350_v48, %v349_v50 }
  0x53   : > { %v253_v38 = vadd.f32 %v252_v29, %v251_v33 }
  0x54   : > { %v353_v58 = vadd.f32 %v352_v52, %v351_v54 }
  0x55   : > { %v255_v43 = vadd.f32 %v254_v35, %v253_v38 }
  0x56   : > { %v355_v61 = vadd.f32 %v354_v56, %v353_v58 }
  0x57   : > { %v257_v47 = vadd.f32 %v256_v40, %v255_v43 }
  0x58   : > { %v357_v0 = vadd.f32 %v356_v60, %v355_v61 }
  0x59   : > { %v258_v51 = vrot.slane %v257_v47, 4 }
  0x5a   : > { %v359_v2 = vadd.f32 %v358_v63, %v357_v0 }
  0x5b   : > { %v259_v55 = vadd.f32 %v258_v51, %v257_v47 }
  0x5c   : > { %v360_v4 = vrot.slane %v359_v2, 4 }
  0x5d   : > { %v260_v59 = vrot.slane %v259_v55, 2 }
  0x5e   : > { %v361_v6 = vadd.f32 %v360_v4, %v359_v2 }
  0x5f   : > { %v261_v62 = vadd.f32 %v260_v59, %v259_v55 }
  0x60   : > { %v362_v7 = vrot.slane %v361_v6, 2 }
  0x61   : > { %v262_v1 = vrot.slane %v261_v62, 1 }
  0x62   : > { %v363_v8 = vadd.f32 %v362_v7, %v361_v6 }
  0x63   : > { %v263_v3 = vadd.f32 %v262_v1, %v261_v62 }
  0x64   : > { %v364_v9 = vrot.slane %v363_v8, 1 }
  0x65   : > { %v264_v5 = vmul.f32 0.00390625, %v263_v3 }
  0x66   : > { %v365_v10 = vadd.f32 %v364_v9, %v363_v8 }
  0x67   : > { %368 = vst.msk [vmem:[%s151_s3] sm:$0x1] %vm367_vm1, %v264_v5 }
  0x68   : > { %v366_v11 = vmul.f32 0.00390625, %v365_v10 }
  0x6a   : > { %369 = vst.msk [vmem:[%s151_s3 + $0x1] sm:$0x1] %vm367_vm1, %v366_v11 }
  0x6b   : > { %522 = shalt.err (!%p519_p3)
}
  0x6c   : > { %s523_s22 = scalar_lea.hbm %s782_s8, 32  ;;  %s527_s25 = scalar_lea.hbm %s826_s2, 64 }
  0x6d   : > { %p524_p4 = scmp.ne.s32.totalorder %s782_s8, %s523_s22  ;;  %p528_p9 = scmp.lt.u32.totalorder %s782_s8, %s826_s2 }
  0x6e   : > { %p529_p10 = scmp.lt.u32.totalorder %s527_s25, %s523_s22  ;;  %p531_p12 = scmp.lt.u32.totalorder %s523_s22, %s782_s8 }
  0x6f   : > { %p525_p7 = pnand %p524_p4, %p627_p5 }
  0x70   : > { %p530_p11 = por %p529_p10, %p528_p9 }
  0x71   : > { %p526_p8 = pneg %p525_p7 }
  0x72   : > { %p532_p13 = por %p531_p12, %p530_p11 }
  0x74   : > { %p533_p0 = pnand %p532_p13, %p526_p8 }
  0x76   : > { %536 = shalt.err (!%p533_p0)
}
  0x77   : > { %470 = dma.vmem_to_hbm [thread:$0]  (%p627_p5), %s784_s5, 32, %s782_s8, %s371_s14  }
  0x78 PF: > { %p476_p1 = scmp.ge.s32.totalorder %s571_s12, 2  ;;  %s396_s28 = sand.u32 1, %s559_s9  }
  0x79   : > { %s397_s29 = scalar_lea.sflag [#allocation3], %s396_s28 }
  0x7a   : > { %p473_p2 = pnand %p476_p1, %p631_p6 }
  0x7c   : > { %554 = dma.done.wait (!%p473_p2), %s397_s29, 32  }
  0x7d   : > { %556 = vsyncadd (!%p473_p2), %s397_s29, 4294967264  ;;  %p12_p3 = scmp.ge.s32.totalorder %s614_s15, 4   ;;  %s829_s9 = smov %s563_s10 }
  0x7e   : > { %s830_s10 = smov %s567_s11  ;;  %s831_s11 = smov %s625_s18 }
  0x7f   : > { %s832_s12 = smov %s614_s15  ;;  %14 = sbr.rel (!%p12_p3) target bundleno = 3 (0x3), region = 66 }
  0x86   :  { %402 = vsyncpa [#allocation3], 1 }
  0x87   :  { %404 = vsyncpa [#allocation3 + $0x1], 1 }

</bundles_post_ra>
